<compile_context>
chip_gen: v5e
topology: v5e:2x2
jax: 0.10.0
libtpu: 0.0.40
codegen_flags: <defaults>
</compile_context>

<pallas_src>
import numpy as np

import jax
import jax.numpy as jnp
from jax.experimental import pallas as pl
from jax.experimental.pallas import tpu as pltpu

# ---- hyperparameters (small, consistent with the tutorial module) ----
B = 2          # batch
S = 8          # sequence length
D_MODEL = 32   # d_model
D_FF = 64      # d_ff
D_K = 16       # d_k
D_V = 16       # d_v
N_HEADS = 4    # n_heads
EPS = 1e-5     # nn.LayerNorm default
NEG = -1e9     # masked_fill value

assert D_K == D_V  # one head-column mask serves both Q/K and V


def _layer_norm(z, gamma, beta):
    mu = jnp.mean(z, axis=-1, keepdims=True)
    var = jnp.mean((z - mu) ** 2, axis=-1, keepdims=True)
    # rsqrt + multiply -> EUP slot (instead of VALU sqrt + divide).
    return (z - mu) * jax.lax.rsqrt(var + EPS) * gamma + beta


def encoder_layer_kernel(
    x_ref, mask_add_ref, head_mask_ref,
    wqkv_ref, bqkv_ref,
    wo_ref, bo_ref, g1_ref, be1_ref,
    w1_ref, b1_ref, w2_ref, b2_ref, g2_ref, be2_ref,
    out_ref, attn_ref,
):
    f32 = jnp.float32
    bf16 = jnp.bfloat16
    HDK = N_HEADS * D_K
    HDV = N_HEADS * D_V

    x = x_ref[...]                                        # (B*S, D_MODEL) f32

    # --- fused QKV projection: one bf16 MXU launch, f32 accumulation.
    # 1/sqrt(d_k) is pre-folded into the Q slice of wqkv/bqkv on the host.
    qkv = jnp.dot(x.astype(bf16), wqkv_ref[...],
                  preferred_element_type=f32) + bqkv_ref[...]   # (B*S, 3*HDK)
    q = qkv[:, 0 * HDK:1 * HDK]                           # (B*S, HDK), scaled
    k = qkv[:, 1 * HDK:2 * HDK]                           # (B*S, HDK)
    v = qkv[:, 2 * HDK:2 * HDK + HDV]                     # (B*S, HDV)

    head_mask = head_mask_ref[...]                        # (H, 1, HDK) one-hot blocks

    # --- replicate q per head with other heads' columns zeroed; the cross-head
    # contraction terms then vanish, so a single dense matmul gives every
    # (head, batch) score block at once.
    q_h = q[None, :, :] * head_mask                       # (H, B*S, HDK) f32
    q2 = q_h.reshape(N_HEADS * B * S, HDK)                # leading-dim merge (free)

    scores = jnp.einsum("qc,kc->qk", q2.astype(bf16), k.astype(bf16),
                        preferred_element_type=f32)       # (H*B*S, B*S)
    # additive mask: -1e9 on pad keys and on cross-batch blocks (host-built)
    scores = scores + mask_add_ref[...]

    smax = jnp.max(scores, axis=-1, keepdims=True)
    p = jnp.exp(scores - smax)
    denom = jnp.sum(p, axis=-1, keepdims=True)
    attn = p * pl.reciprocal(denom, approx=False)         # exact: rows sum to 1
    attn_ref[...] = attn                                  # single f32 store

    # --- context: H-batched matmul with per-head-masked V; summing over heads
    # recombines directly into merged-head (B*S, HDV) layout (no transpose).
    attn3 = attn.reshape(N_HEADS, B * S, B * S)           # leading-dim split (free)
    v_h = v[None, :, :] * head_mask                       # (H, B*S, HDV)
    ctx = jnp.einsum("hqk,hkc->hqc", attn3.astype(bf16), v_h.astype(bf16),
                     preferred_element_type=f32)          # (H, B*S, HDV)
    context = jnp.sum(ctx, axis=0)                        # (B*S, HDV)

    # --- output projection + residual + LayerNorm
    mha = jnp.dot(context.astype(bf16), wo_ref[...],
                  preferred_element_type=f32) + bo_ref[...]
    y1 = _layer_norm(mha + x, g1_ref[...], be1_ref[...])

    # --- position-wise FFN (Conv1d k=1 == per-position Linear) + residual + LN
    h1 = jnp.maximum(
        jnp.dot(y1.astype(bf16), w1_ref[...], preferred_element_type=f32)
        + b1_ref[...], 0.0)
    ff = jnp.dot(h1.astype(bf16), w2_ref[...],
                 preferred_element_type=f32) + b2_ref[...]
    y2 = _layer_norm(ff + y1, g2_ref[...], be2_ref[...])

    out_ref[...] = y2                                     # (B*S, D_MODEL)


def _build_additive_mask(mask_bool):
    """(B,S,S) bool (True = masked) -> (H*B*S, B*S) f32 additive bias.

    -1e9 where the key is padded OR where query/key come from different batch
    elements (the latter implements the batch block-diagonal structure of the
    single big score matmul)."""
    pad = mask_bool.astype(jnp.float32)                       # (B,S,S)
    same = jnp.eye(B, dtype=jnp.float32)[:, None, :, None]    # (B,1,B,1)
    add = (1.0 - same) * NEG + same * pad[:, :, None, :] * NEG  # (B,S,B,S)
    add = add.reshape(B * S, B * S)
    return jnp.broadcast_to(add[None], (N_HEADS, B * S, B * S)).reshape(
        N_HEADS * B * S, B * S)


def _build_head_mask():
    """(H, 1, H*D_K) f32 one-hot column mask selecting each head's columns."""
    head_ids = jnp.arange(N_HEADS)[:, None, None]
    col_ids = jnp.arange(N_HEADS * D_K)[None, None, :]
    return (col_ids // D_K == head_ids).astype(jnp.float32)


def encoder_layer(x, mask_bool, params):
    """x: (B, S, D_MODEL) f32, mask_bool: (B, S, S) bool (True = masked)."""
    scale = jnp.float32(1.0 / np.sqrt(D_K))
    # Host-side fusion of QKV weights; fold the attention scale into the Q
    # slice; ship matmul weights as bf16 (f32 accumulation in-kernel).
    wqkv = jnp.concatenate(
        [params["wq"] * scale, params["wk"], params["wv"]],
        axis=1).astype(jnp.bfloat16)                       # (D, 3*H*D_K)
    bqkv = jnp.concatenate(
        [params["bq"] * scale, params["bk"], params["bv"]], axis=1)  # f32

    x2d = x.reshape(B * S, D_MODEL)
    mask_add = _build_additive_mask(mask_bool)
    head_mask = _build_head_mask()

    out_shapes = (
        jax.ShapeDtypeStruct((B * S, D_MODEL), jnp.float32),
        jax.ShapeDtypeStruct((N_HEADS * B * S, B * S), jnp.float32),
    )
    vmem = pl.BlockSpec(memory_space=pltpu.MemorySpace.VMEM)

    fn = pl.pallas_call(
        encoder_layer_kernel,
        out_shape=out_shapes,
        in_specs=[vmem] * 15,
        out_specs=(vmem, vmem),
    )
    out2d, attn_flat = fn(
        x2d, mask_add, head_mask,
        wqkv, bqkv,
        params["wo"].astype(jnp.bfloat16), params["bo"],
        params["g1"], params["be1"],
        params["w1"].astype(jnp.bfloat16), params["b1"],
        params["w2"].astype(jnp.bfloat16), params["b2"],
        params["g2"], params["be2"],
    )

    out = out2d.reshape(B, S, D_MODEL)
    # Extract the per-(head, batch) diagonal blocks of the big score matrix
    # (host-side view work only).
    a = attn_flat.reshape(N_HEADS, B, S, B, S)
    attn = a[:, jnp.arange(B), :, jnp.arange(B), :]        # -> (B, H, S, S)
    return out, attn


def encoder_layer_ref(x, mask_bool, p):
    """Pure-JAX f32 reference matching the PyTorch forward semantics."""
    q = x @ p["wq"] + p["bq"]
    k = x @ p["wk"] + p["bk"]
    v = x @ p["wv"] + p["bv"]
    q = q.reshape(B, S, N_HEADS, D_K).transpose(0, 2, 1, 3)
    k = k.reshape(B, S, N_HEADS, D_K).transpose(0, 2, 1, 3)
    v = v.reshape(B, S, N_HEADS, D_V).transpose(0, 2, 1, 3)
    scores = jnp.einsum("bhqd,bhkd->bhqk", q, k) / np.sqrt(D_K)
    scores = jnp.where(mask_bool[:, None, :, :], NEG, scores)
    attn = jax.nn.softmax(scores, axis=-1)
    ctx = jnp.einsum("bhqk,bhkd->bhqd", attn, v)
    ctx = ctx.transpose(0, 2, 1, 3).reshape(B, S, N_HEADS * D_V)
    mha = ctx @ p["wo"] + p["bo"]
    y1 = _layer_norm(mha + x, p["g1"], p["be1"])
    h1 = jnp.maximum(y1 @ p["w1"] + p["b1"], 0.0)
    y2 = _layer_norm(h1 @ p["w2"] + p["b2"] + y1, p["g2"], p["be2"])
    return y2, attn


def make_params(key):
    ks = jax.random.split(key, 8)
    s = 0.1
    p = {
        "wq": s * jax.random.normal(ks[0], (D_MODEL, N_HEADS * D_K), jnp.float32),
        "bq": s * jax.random.normal(ks[1], (1, N_HEADS * D_K), jnp.float32),
        "wk": s * jax.random.normal(ks[2], (D_MODEL, N_HEADS * D_K), jnp.float32),
        "bk": s * jax.random.normal(ks[3], (1, N_HEADS * D_K), jnp.float32),
        "wv": s * jax.random.normal(ks[4], (D_MODEL, N_HEADS * D_V), jnp.float32),
        "bv": s * jax.random.normal(ks[5], (1, N_HEADS * D_V), jnp.float32),
        "wo": s * jax.random.normal(ks[6], (N_HEADS * D_V, D_MODEL), jnp.float32),
        "bo": s * jax.random.normal(ks[7], (1, D_MODEL), jnp.float32),
        "g1": jnp.ones((1, D_MODEL), jnp.float32),
        "be1": jnp.zeros((1, D_MODEL), jnp.float32),
        "g2": jnp.ones((1, D_MODEL), jnp.float32),
        "be2": jnp.zeros((1, D_MODEL), jnp.float32),
    }
    k2 = jax.random.split(jax.random.fold_in(key, 1), 4)
    # Conv1d(k=1) weights stored pre-transposed: (in, out) so x @ w matches conv.
    p["w1"] = s * jax.random.normal(k2[0], (D_MODEL, D_FF), jnp.float32)
    p["b1"] = s * jax.random.normal(k2[1], (1, D_FF), jnp.float32)
    p["w2"] = s * jax.random.normal(k2[2], (D_FF, D_MODEL), jnp.float32)
    p["b2"] = s * jax.random.normal(k2[3], (1, D_MODEL), jnp.float32)
    return p


if __name__ == "__main__":
    key = jax.random.PRNGKey(0)
    kx, kp = jax.random.split(key)

    x = jax.random.normal(kx, (B, S, D_MODEL), jnp.float32)
    # self-attention pad mask: mask out the last 2 key positions
    mask_bool = jnp.zeros((B, S, S), jnp.bool_).at[:, :, -2:].set(True)

    params = make_params(kp)

    enc_out, attn = encoder_layer(x, mask_bool, params)
    enc_out = jax.block_until_ready(enc_out)
    attn = jax.block_until_ready(attn)

    ref_out, ref_attn = encoder_layer_ref(x, mask_bool, params)

    assert enc_out.shape == (B, S, D_MODEL)
    assert attn.shape == (B, N_HEADS, S, S)
    assert bool(jnp.all(jnp.isfinite(enc_out)))
    # bf16 matmul operands (f32 accumulation) -> slightly looser tolerance.
    assert bool(jnp.allclose(enc_out, ref_out, atol=3e-2, rtol=3e-2))
    assert bool(jnp.allclose(attn, ref_attn, atol=2e-2, rtol=2e-2))

    print("KERNEL_OK")
</pallas_src>

<mosaic_0001>
module attributes {stable_mosaic.version = 11 : i64} {
  func.func @encoder_layer_kernel(%arg0: memref<16x32xf32, #tpu.memory_space<vmem>>, %arg1: memref<64x16xf32, #tpu.memory_space<vmem>>, %arg2: memref<4x1x64xf32, #tpu.memory_space<vmem>>, %arg3: memref<32x192xbf16, #tpu.memory_space<vmem>>, %arg4: memref<1x192xf32, #tpu.memory_space<vmem>>, %arg5: memref<64x32xbf16, #tpu.memory_space<vmem>>, %arg6: memref<1x32xf32, #tpu.memory_space<vmem>>, %arg7: memref<1x32xf32, #tpu.memory_space<vmem>>, %arg8: memref<1x32xf32, #tpu.memory_space<vmem>>, %arg9: memref<32x64xbf16, #tpu.memory_space<vmem>>, %arg10: memref<1x64xf32, #tpu.memory_space<vmem>>, %arg11: memref<64x32xbf16, #tpu.memory_space<vmem>>, %arg12: memref<1x32xf32, #tpu.memory_space<vmem>>, %arg13: memref<1x32xf32, #tpu.memory_space<vmem>>, %arg14: memref<1x32xf32, #tpu.memory_space<vmem>>, %arg15: memref<16x32xf32, #tpu.memory_space<vmem>>, %arg16: memref<64x16xf32, #tpu.memory_space<vmem>>) attributes {dimension_semantics = [], scalar_prefetch = 0 : i64, scratch_operands = 0 : i64, tpu.core_type = #tpu.core_type<tc>} {
    %c0 = arith.constant 0 : index
    %c0_0 = arith.constant 0 : index
    %0 = vector.load %arg0[%c0, %c0_0] : memref<16x32xf32, #tpu.memory_space<vmem>>, vector<16x32xf32>
    %1 = arith.truncf %0 : vector<16x32xf32> to vector<16x32xbf16>
    %c0_1 = arith.constant 0 : index
    %c0_2 = arith.constant 0 : index
    %2 = vector.load %arg3[%c0_1, %c0_2] : memref<32x192xbf16, #tpu.memory_space<vmem>>, vector<32x192xbf16>
    %cst = arith.constant dense<0.000000e+00> : vector<16x192xf32>
    %3 = tpu.matmul %1, %2, %cst {dimension_numbers = #tpu.dot_dimension_numbers<[1], [0], [0], [1], [0, 0, 1, 1], [], []>} : vector<16x32xbf16>, vector<32x192xbf16>, vector<16x192xf32> -> vector<16x192xf32>
    %c0_3 = arith.constant 0 : index
    %c0_4 = arith.constant 0 : index
    %4 = vector.load %arg4[%c0_3, %c0_4] : memref<1x192xf32, #tpu.memory_space<vmem>>, vector<1x192xf32>
    %5 = vector.broadcast %4 : vector<1x192xf32> to vector<16x192xf32>
    %6 = arith.addf %3, %5 : vector<16x192xf32>
    %7 = vector.extract_strided_slice %6 {offsets = [0, 0], sizes = [16, 64], strides = [1, 1]} : vector<16x192xf32> to vector<16x64xf32>
    %8 = vector.extract_strided_slice %6 {offsets = [0, 64], sizes = [16, 64], strides = [1, 1]} : vector<16x192xf32> to vector<16x64xf32>
    %9 = vector.extract_strided_slice %6 {offsets = [0, 128], sizes = [16, 64], strides = [1, 1]} : vector<16x192xf32> to vector<16x64xf32>
    %c0_5 = arith.constant 0 : index
    %c0_6 = arith.constant 0 : index
    %c0_7 = arith.constant 0 : index
    %10 = vector.load %arg2[%c0_5, %c0_6, %c0_7] : memref<4x1x64xf32, #tpu.memory_space<vmem>>, vector<4x1x64xf32>
    %11 = vector.shape_cast %7 : vector<16x64xf32> to vector<1x16x64xf32>
    %12 = vector.broadcast %11 : vector<1x16x64xf32> to vector<4x16x64xf32>
    %13 = vector.broadcast %10 : vector<4x1x64xf32> to vector<4x16x64xf32>
    %14 = arith.mulf %12, %13 : vector<4x16x64xf32>
    %15 = vector.shape_cast %14 : vector<4x16x64xf32> to vector<64x64xf32>
    %16 = arith.truncf %15 : vector<64x64xf32> to vector<64x64xbf16>
    %17 = arith.truncf %8 : vector<16x64xf32> to vector<16x64xbf16>
    "tpu.trace_start"() <{level = 10 : i32, message = "qc,kc->qk"}> : () -> ()
    %cst_8 = arith.constant dense<0.000000e+00> : vector<64x16xf32>
    %18 = tpu.matmul %16, %17, %cst_8 {dimension_numbers = #tpu.dot_dimension_numbers<[1], [1], [0], [0], [0, 0, 1, 0], [], []>} : vector<64x64xbf16>, vector<16x64xbf16>, vector<64x16xf32> -> vector<64x16xf32>
    "tpu.trace_stop"() : () -> ()
    %c0_9 = arith.constant 0 : index
    %c0_10 = arith.constant 0 : index
    %19 = vector.load %arg1[%c0_9, %c0_10] : memref<64x16xf32, #tpu.memory_space<vmem>>, vector<64x16xf32>
    %20 = arith.addf %18, %19 : vector<64x16xf32>
    %cst_11 = arith.constant dense<0xFF800000> : vector<64xf32>
    %21 = vector.multi_reduction <maximumf>, %20, %cst_11 [1] : vector<64x16xf32> to vector<64xf32>
    %22 = vector.shape_cast %21 : vector<64xf32> to vector<64x1xf32>
    %23 = vector.broadcast %22 : vector<64x1xf32> to vector<64x16xf32>
    %24 = arith.subf %20, %23 : vector<64x16xf32>
    %25 = math.exp %24 : vector<64x16xf32>
    %cst_12 = arith.constant dense<0.000000e+00> : vector<64xf32>
    %26 = vector.multi_reduction <add>, %25, %cst_12 [1] : vector<64x16xf32> to vector<64xf32>
    %27 = vector.shape_cast %26 : vector<64xf32> to vector<64x1xf32>
    %28 = tpu.reciprocal %27 : vector<64x1xf32> -> vector<64x1xf32>
    %29 = vector.broadcast %28 : vector<64x1xf32> to vector<64x16xf32>
    %30 = arith.mulf %25, %29 : vector<64x16xf32>
    %c0_13 = arith.constant 0 : index
    %c0_14 = arith.constant 0 : index
    %31 = vector.load %arg16[%c0_13, %c0_14] : memref<64x16xf32, #tpu.memory_space<vmem>>, vector<64x16xf32>
    tpu.vector_store %arg16[%c0_13, %c0_14], %30 {strides = array<i32>} : memref<64x16xf32, #tpu.memory_space<vmem>>, vector<64x16xf32>,
    %32 = vector.shape_cast %30 : vector<64x16xf32> to vector<4x16x16xf32>
    %33 = vector.shape_cast %9 : vector<16x64xf32> to vector<1x16x64xf32>
    %34 = vector.broadcast %33 : vector<1x16x64xf32> to vector<4x16x64xf32>
    %35 = vector.broadcast %10 : vector<4x1x64xf32> to vector<4x16x64xf32>
    %36 = arith.mulf %34, %35 : vector<4x16x64xf32>
    %37 = arith.truncf %32 : vector<4x16x16xf32> to vector<4x16x16xbf16>
    %38 = arith.truncf %36 : vector<4x16x64xf32> to vector<4x16x64xbf16>
    "tpu.trace_start"() <{level = 10 : i32, message = "hqk,hkc->hqc"}> : () -> ()
    %cst_15 = arith.constant dense<0.000000e+00> : vector<4x16x64xf32>
    %39 = tpu.matmul %37, %38, %cst_15 {dimension_numbers = #tpu.dot_dimension_numbers<[2], [1], [1], [2], [0, 0, 0, 1, 1, 2], [0], [0]>} : vector<4x16x16xbf16>, vector<4x16x64xbf16>, vector<4x16x64xf32> -> vector<4x16x64xf32>
    "tpu.trace_stop"() : () -> ()
    %cst_16 = arith.constant dense<0.000000e+00> : vector<16x64xf32>
    %40 = vector.multi_reduction <add>, %39, %cst_16 [0] : vector<4x16x64xf32> to vector<16x64xf32>
    %41 = arith.truncf %40 : vector<16x64xf32> to vector<16x64xbf16>
    %c0_17 = arith.constant 0 : index
    %c0_18 = arith.constant 0 : index
    %42 = vector.load %arg5[%c0_17, %c0_18] : memref<64x32xbf16, #tpu.memory_space<vmem>>, vector<64x32xbf16>
    %cst_19 = arith.constant dense<0.000000e+00> : vector<16x32xf32>
    %43 = tpu.matmul %41, %42, %cst_19 {dimension_numbers = #tpu.dot_dimension_numbers<[1], [0], [0], [1], [0, 0, 1, 1], [], []>} : vector<16x64xbf16>, vector<64x32xbf16>, vector<16x32xf32> -> vector<16x32xf32>
    %c0_20 = arith.constant 0 : index
    %c0_21 = arith.constant 0 : index
    %44 = vector.load %arg6[%c0_20, %c0_21] : memref<1x32xf32, #tpu.memory_space<vmem>>, vector<1x32xf32>
    %45 = vector.broadcast %44 : vector<1x32xf32> to vector<16x32xf32>
    %46 = arith.addf %43, %45 : vector<16x32xf32>
    %47 = arith.addf %46, %0 : vector<16x32xf32>
    %c0_22 = arith.constant 0 : index
    %c0_23 = arith.constant 0 : index
    %48 = vector.load %arg7[%c0_22, %c0_23] : memref<1x32xf32, #tpu.memory_space<vmem>>, vector<1x32xf32>
    %c0_24 = arith.constant 0 : index
    %c0_25 = arith.constant 0 : index
    %49 = vector.load %arg8[%c0_24, %c0_25] : memref<1x32xf32, #tpu.memory_space<vmem>>, vector<1x32xf32>
    %cst_26 = arith.constant dense<0.000000e+00> : vector<16xf32>
    %50 = vector.multi_reduction <add>, %47, %cst_26 [1] : vector<16x32xf32> to vector<16xf32>
    %51 = vector.shape_cast %50 : vector<16xf32> to vector<16x1xf32>
    %cst_27 = arith.constant 3.200000e+01 : f32
    %52 = vector.broadcast %cst_27 : f32 to vector<16x1xf32>
    %53 = arith.divf %51, %52 : vector<16x1xf32>
    %54 = vector.broadcast %53 : vector<16x1xf32> to vector<16x32xf32>
    %55 = arith.subf %47, %54 : vector<16x32xf32>
    %56 = arith.mulf %55, %55 : vector<16x32xf32>
    %cst_28 = arith.constant dense<0.000000e+00> : vector<16xf32>
    %57 = vector.multi_reduction <add>, %56, %cst_28 [1] : vector<16x32xf32> to vector<16xf32>
    %58 = vector.shape_cast %57 : vector<16xf32> to vector<16x1xf32>
    %cst_29 = arith.constant 3.200000e+01 : f32
    %59 = vector.broadcast %cst_29 : f32 to vector<16x1xf32>
    %60 = arith.divf %58, %59 : vector<16x1xf32>
    %61 = vector.broadcast %53 : vector<16x1xf32> to vector<16x32xf32>
    %62 = arith.subf %47, %61 : vector<16x32xf32>
    %cst_30 = arith.constant 9.99999974E-6 : f32
    %63 = vector.broadcast %cst_30 : f32 to vector<16x1xf32>
    %64 = arith.addf %60, %63 : vector<16x1xf32>
    %65 = math.rsqrt %64 : vector<16x1xf32>
    %66 = vector.broadcast %65 : vector<16x1xf32> to vector<16x32xf32>
    %67 = arith.mulf %62, %66 : vector<16x32xf32>
    %68 = vector.broadcast %48 : vector<1x32xf32> to vector<16x32xf32>
    %69 = arith.mulf %67, %68 : vector<16x32xf32>
    %70 = vector.broadcast %49 : vector<1x32xf32> to vector<16x32xf32>
    %71 = arith.addf %69, %70 : vector<16x32xf32>
    %72 = arith.truncf %71 : vector<16x32xf32> to vector<16x32xbf16>
    %c0_31 = arith.constant 0 : index
    %c0_32 = arith.constant 0 : index
    %73 = vector.load %arg9[%c0_31, %c0_32] : memref<32x64xbf16, #tpu.memory_space<vmem>>, vector<32x64xbf16>
    %cst_33 = arith.constant dense<0.000000e+00> : vector<16x64xf32>
    %74 = tpu.matmul %72, %73, %cst_33 {dimension_numbers = #tpu.dot_dimension_numbers<[1], [0], [0], [1], [0, 0, 1, 1], [], []>} : vector<16x32xbf16>, vector<32x64xbf16>, vector<16x64xf32> -> vector<16x64xf32>
    %c0_34 = arith.constant 0 : index
    %c0_35 = arith.constant 0 : index
    %75 = vector.load %arg10[%c0_34, %c0_35] : memref<1x64xf32, #tpu.memory_space<vmem>>, vector<1x64xf32>
    %76 = vector.broadcast %75 : vector<1x64xf32> to vector<16x64xf32>
    %77 = arith.addf %74, %76 : vector<16x64xf32>
    %cst_36 = arith.constant 0.000000e+00 : f32
    %78 = vector.broadcast %cst_36 : f32 to vector<16x64xf32>
    %79 = arith.maximumf %77, %78 : vector<16x64xf32>
    %80 = arith.truncf %79 : vector<16x64xf32> to vector<16x64xbf16>
    %c0_37 = arith.constant 0 : index
    %c0_38 = arith.constant 0 : index
    %81 = vector.load %arg11[%c0_37, %c0_38] : memref<64x32xbf16, #tpu.memory_space<vmem>>, vector<64x32xbf16>
    %cst_39 = arith.constant dense<0.000000e+00> : vector<16x32xf32>
    %82 = tpu.matmul %80, %81, %cst_39 {dimension_numbers = #tpu.dot_dimension_numbers<[1], [0], [0], [1], [0, 0, 1, 1], [], []>} : vector<16x64xbf16>, vector<64x32xbf16>, vector<16x32xf32> -> vector<16x32xf32>
    %c0_40 = arith.constant 0 : index
    %c0_41 = arith.constant 0 : index
    %83 = vector.load %arg12[%c0_40, %c0_41] : memref<1x32xf32, #tpu.memory_space<vmem>>, vector<1x32xf32>
    %84 = vector.broadcast %83 : vector<1x32xf32> to vector<16x32xf32>
    %85 = arith.addf %82, %84 : vector<16x32xf32>
    %86 = arith.addf %85, %71 : vector<16x32xf32>
    %c0_42 = arith.constant 0 : index
    %c0_43 = arith.constant 0 : index
    %87 = vector.load %arg13[%c0_42, %c0_43] : memref<1x32xf32, #tpu.memory_space<vmem>>, vector<1x32xf32>
    %c0_44 = arith.constant 0 : index
    %c0_45 = arith.constant 0 : index
    %88 = vector.load %arg14[%c0_44, %c0_45] : memref<1x32xf32, #tpu.memory_space<vmem>>, vector<1x32xf32>
    %cst_46 = arith.constant dense<0.000000e+00> : vector<16xf32>
    %89 = vector.multi_reduction <add>, %86, %cst_46 [1] : vector<16x32xf32> to vector<16xf32>
    %90 = vector.shape_cast %89 : vector<16xf32> to vector<16x1xf32>
    %cst_47 = arith.constant 3.200000e+01 : f32
    %91 = vector.broadcast %cst_47 : f32 to vector<16x1xf32>
    %92 = arith.divf %90, %91 : vector<16x1xf32>
    %93 = vector.broadcast %92 : vector<16x1xf32> to vector<16x32xf32>
    %94 = arith.subf %86, %93 : vector<16x32xf32>
    %95 = arith.mulf %94, %94 : vector<16x32xf32>
    %cst_48 = arith.constant dense<0.000000e+00> : vector<16xf32>
    %96 = vector.multi_reduction <add>, %95, %cst_48 [1] : vector<16x32xf32> to vector<16xf32>
    %97 = vector.shape_cast %96 : vector<16xf32> to vector<16x1xf32>
    %cst_49 = arith.constant 3.200000e+01 : f32
    %98 = vector.broadcast %cst_49 : f32 to vector<16x1xf32>
    %99 = arith.divf %97, %98 : vector<16x1xf32>
    %100 = vector.broadcast %92 : vector<16x1xf32> to vector<16x32xf32>
    %101 = arith.subf %86, %100 : vector<16x32xf32>
    %cst_50 = arith.constant 9.99999974E-6 : f32
    %102 = vector.broadcast %cst_50 : f32 to vector<16x1xf32>
    %103 = arith.addf %99, %102 : vector<16x1xf32>
    %104 = math.rsqrt %103 : vector<16x1xf32>
    %105 = vector.broadcast %104 : vector<16x1xf32> to vector<16x32xf32>
    %106 = arith.mulf %101, %105 : vector<16x32xf32>
    %107 = vector.broadcast %87 : vector<1x32xf32> to vector<16x32xf32>
    %108 = arith.mulf %106, %107 : vector<16x32xf32>
    %109 = vector.broadcast %88 : vector<1x32xf32> to vector<16x32xf32>
    %110 = arith.addf %108, %109 : vector<16x32xf32>
    %c0_51 = arith.constant 0 : index
    %c0_52 = arith.constant 0 : index
    %111 = vector.load %arg15[%c0_51, %c0_52] : memref<16x32xf32, #tpu.memory_space<vmem>>, vector<16x32xf32>
    tpu.vector_store %arg15[%c0_51, %c0_52], %110 {strides = array<i32>} : memref<16x32xf32, #tpu.memory_space<vmem>>, vector<16x32xf32>,
    return
  }
}

</mosaic_0001>

<bundles_post_ra>
// kernel: tpu_custom_call.1
= control target key start
LH: loop header
LB: loop body
LE: loop exit
PB: predicated region body
PF: predicated region fallthrough
CT: control target
= control target key end

     0   :  { %s1393_s0 = inlined_call_operand.vmem [shape: f32[16,32], index: 0, kind: input, shape index: {}]   ;;  %s1394_s1 = inlined_call_operand.vmem [shape: f32[64,16], index: 1, kind: input, shape index: {}]   ;;  %s1395_s2 = inlined_call_operand.vmem [shape: f32[4,1,64], index: 2, kind: input, shape index: {}]   ;;  %s1396_s3 = inlined_call_operand.vmem [shape: bf16[32,192], index: 3, kind: input, shape index: {}]   ;;  %s1397_s4 = inlined_call_operand.vmem [shape: f32[1,192], index: 4, kind: input, shape index: {}]   ;;  %s1398_s5 = inlined_call_operand.vmem [shape: bf16[64,32], index: 5, kind: input, shape index: {}]   ;;  %s1399_s6 = inlined_call_operand.vmem [shape: f32[1,32], index: 6, kind: input, shape index: {}]   ;;  %s1400_s7 = inlined_call_operand.vmem [shape: f32[1,32], index: 7, kind: input, shape index: {}]   ;;  %s1401_s8 = inlined_call_operand.vmem [shape: f32[1,32], index: 8, kind: input, shape index: {}]   ;;  %s1402_s9 = inlined_call_operand.vmem [shape: bf16[32,64], index: 9, kind: input, shape index: {}]   ;;  %s1403_s10 = inlined_call_operand.vmem [shape: f32[1,64], index: 10, kind: input, shape index: {}]   ;;  %s1404_s11 = inlined_call_operand.vmem [shape: bf16[64,32], index: 11, kind: input, shape index: {}]   ;;  %s1405_s12 = inlined_call_operand.vmem [shape: f32[1,32], index: 12, kind: input, shape index: {}]   ;;  %s1406_s13 = inlined_call_operand.vmem [shape: f32[1,32], index: 13, kind: input, shape index: {}]   ;;  %s1407_s14 = inlined_call_operand.vmem [shape: f32[1,32], index: 14, kind: input, shape index: {}]   ;;  %s1408_s15 = inlined_call_operand.hbm [shape: f32[16,32], index: 15, kind: output, shape index: {0}]   ;;  %s1409_s16 = inlined_call_operand.vmem [shape: f32[64,16], index: 16, kind: output, shape index: {1}]  }
   0x1   :  { %1411 = sst [smem:[#allocation5_spill]] %s1393_s0 }
   0x2   :  { %v860_v0 = vld [vmem:[%s1396_s3 + $0x10] sm:$0xf]  ;;  %v922_v1 = vld [vmem:[%s1396_s3 + $0x14] sm:$0xf0]  ;;  %v852_v2 = vld [vmem:[%s1396_s3] sm:$0xf] }
   0x3   :  { %v861_v3 = vor.u32 %v922_v1, %v860_v0  ;;  %v920_v4 = vld [vmem:[%s1396_s3 + $0x4] sm:$0xf0]  ;;  %s1412_s0 = sld [smem:[#allocation5_spill]] }
   0x4   :  { %v853_v6 = vor.u32 %v920_v4, %v852_v2 }
   0x5   :  { %97 = vmatpush.bf16.msra.mxu0 %v861_v3 }
   0x9   :  { %v1122_v5 = vld [vmem:[%s1412_s0] sm:$0xff]  ;;  %v1127_v7 = vld [vmem:[%s1412_s0 + $0x8] sm:$0xff] }
   0xa   :  { %v1131_v8 = vpack.c.bf16 %v1127_v7, %v1122_v5 }
   0xb   :  { %22 = vsyncpa [#allocation3], 0  ;;  %98 = vmatpush.bf16.msra.mxu0 %v853_v6  ;;  %vm87_vm0 = vcmask 261120   ;;  %v1138_v9 = vld [vmem:[%s1397_s4] sm:$0x3]  ;;  %vm159_vm1 = vcmask 523264  }
   0xc   :  { %v63_v11 = vperm.slane %v1138_v9, 0  ;;  %v1144_v13 = vld [vmem:[%s1395_s2] ss:$0 sm:$0xff]  ;;  %v1149_v14 = vld [vmem:[%s1395_s2 + $0x1] ss:$0 sm:$0xff]  ;;  %vm204_vm2 = vcmask 130048  }
   0xd   :  { %v1154_v15 = vld [vmem:[%s1395_s2 + $0x2] ss:$0 sm:$0xff]  ;;  %v1159_v17 = vld [vmem:[%s1395_s2 + $0x3] ss:$0 sm:$0xff]  ;;  %s1017_s2 = smov 64   ;;  %v149_v38 = vld [vmem:[%s1394_s1 + $0x8] sm:$0xff] }
   0xe   :  { %866 = vmatmul.msk.bf16.vlgmr.msra.gmra.mxu0 %vm87_vm0, %v1131_v8  ;;  %v148_v34 = vld [vmem:[%s1394_s1] sm:$0xff]  ;;  %v150_v42 = vld [vmem:[%s1394_s1 + $0x10] sm:$0xff]  ;;  %v151_v46 = vld [vmem:[%s1394_s1 + $0x18] sm:$0xff]  ;;  %s834_s22 = sshll.u32 %s1408_s15, 4  ;;  %s835_s22 = int_to_ptr.hbm [resolvable:$true] %s834_s22 }
   0xf   :  { %v152_v50 = vld [vmem:[%s1394_s1 + $0x20] sm:$0xff]  ;;  %v153_v54 = vld [vmem:[%s1394_s1 + $0x28] sm:$0xff]  ;;  %v154_v58 = vld [vmem:[%s1394_s1 + $0x30] sm:$0xff] }
  0x10   :  { %v155_v62 = vld [vmem:[%s1394_s1 + $0x38] sm:$0xff]  ;;  %v921_v2 = vld [vmem:[%s1396_s3 + $0x14] sm:$0xf]  ;;  %v919_v6 = vld [vmem:[%s1396_s3 + $0x4] sm:$0xf] }
  0x11   :  { %v862_v3 = vld [vmem:[%s1396_s3 + $0x18] sm:$0xf0] }
  0x12   :  { %v865_v4 = vor.u32 %v921_v2, %v862_v3 }
  0x14   :  { %111 = vmatpush.bf16.msra.mxu1 %v865_v4 }
  0x8b   :  { %v100_v10 = vpop.f32.mrf.mxu0 }
  0x8c   :  { %v101_v12 = vadd.f32 %v100_v10, %v63_v11  ;;  %v854_v10 = vld [vmem:[%s1396_s3 + $0x8] sm:$0xf0] }
  0x8e   :  { %v135_v19 = vmul.f32 %v1144_v13, %v101_v12  ;;  %v137_v20 = vmul.f32 %v1149_v14, %v101_v12  ;;  %v139_v21 = vmul.f32 %v1154_v15, %v101_v12  ;;  %v141_v26 = vmul.f32 %v1159_v17, %v101_v12 }
  0x93   :  { %v102_v16 = vpop.f32.mrf.mxu0 }
  0x94   :  { %v103_v18 = vadd.f32 %v102_v16, %v63_v11  ;;  %v857_v11 = vor.u32 %v919_v6, %v854_v10 }
  0x96   :  { %v147_v22 = vpack.c.bf16 %v103_v18, %v101_v12  ;;  %v136_v23 = vmul.f32 %v1144_v13, %v103_v18  ;;  %v138_v24 = vmul.f32 %v1149_v14, %v103_v18  ;;  %v140_v25 = vmul.f32 %v1154_v15, %v103_v18  ;;  %112 = vmatpush.bf16.msra.mxu1 %v857_v11 }
  0x97   :  { %v142_v27 = vmul.f32 %v1159_v17, %v103_v18 }
  0x98   :  { %157 = vrot.lane.b32.xlu0 %v147_v22, %s1017_s2  ;;  %v143_v28 = vpack.c.bf16 %v136_v23, %v135_v19  ;;  %v144_v29 = vpack.c.bf16 %v138_v24, %v137_v20  ;;  %v145_v30 = vpack.c.bf16 %v140_v25, %v139_v21 }
  0x99   :  { %v146_v31 = vpack.c.bf16 %v142_v27, %v141_v26  ;;  %867 = vmatmul.msk.bf16.vlgmr.msra.gmra.mxu1 %vm87_vm0, %v1131_v8 }
 0x10a   :  { %v158_v32 = vpop.permute.xlu0 %157 }
 0x10b   :  { %v173_v33 = vsel %vm159_vm1, %v158_v32, 0 }
 0x10c   :  { %182 = vmatpush.bf16.xpose.msra.mxu2 %v173_v33 }
 0x113   :  { %868 = vmatmul.msk.bf16.vlgmr.msra.gmra.mxu2 %vm159_vm1, %v143_v28 }
 0x123   :  { %869 = vmatmul.msk.bf16.gmra.mxu2 %vm159_vm1, %v144_v29 }
 0x133   :  { %870 = vmatmul.msk.bf16.gmra.mxu2 %vm159_vm1, %v145_v30 }
 0x143   :  { %871 = vmatmul.msk.bf16.gmra.mxu2 %vm159_vm1, %v146_v31 }
 0x196   :  { %v184_v35 = vpop.f32.mrf.mxu2 }
 0x197   :  { %v185_v36 = vadd.f32 %v184_v35, %v148_v34 }
 0x199   :  { %v205_v37 = vsel %vm204_vm2, %v185_v36, -inf }
 0x19a   :  { %206 = vmax.xlane.f32.xlu0 %v205_v37 }
 0x19e   :  { %v186_v39 = vpop.f32.mrf.mxu2 }
 0x19f   :  { %v187_v40 = vadd.f32 %v186_v39, %v149_v38 }
 0x1a1   :  { %v208_v41 = vsel %vm204_vm2, %v187_v40, -inf }
 0x1a2   :  { %209 = vmax.xlane.f32.xlu1 %v208_v41 }
 0x1a6   :  { %v189_v43 = vpop.f32.mrf.mxu2 }
 0x1a7   :  { %v190_v44 = vadd.f32 %v189_v43, %v150_v42 }
 0x1a9   :  { %v211_v45 = vsel %vm204_vm2, %v190_v44, -inf }
 0x1aa   :  { %212 = vmax.xlane.f32.xlu1 %v211_v45 }
 0x1ae   :  { %v191_v47 = vpop.f32.mrf.mxu2 }
 0x1af   :  { %v192_v48 = vadd.f32 %v191_v47, %v151_v46 }
 0x1b1   :  { %v214_v49 = vsel %vm204_vm2, %v192_v48, -inf }
 0x1b2   :  { %215 = vmax.xlane.f32.xlu2 %v214_v49 }
 0x1b6   :  { %v194_v51 = vpop.f32.mrf.mxu2 }
 0x1b7   :  { %v195_v52 = vadd.f32 %v194_v51, %v152_v50 }
 0x1b9   :  { %v217_v53 = vsel %vm204_vm2, %v195_v52, -inf }
 0x1ba   :  { %218 = vmax.xlane.f32.xlu2 %v217_v53 }
 0x1be   :  { %v196_v55 = vpop.f32.mrf.mxu2 }
 0x1bf   :  { %v197_v56 = vadd.f32 %v196_v55, %v153_v54  ;;  %v114_v55 = vpop.f32.mrf.mxu1 }
 0x1c1   :  { %v220_v57 = vsel %vm204_vm2, %v197_v56, -inf }
 0x1c2   :  { %221 = vmax.xlane.f32.xlu1 %v220_v57 }
 0x1c6   :  { %v199_v59 = vpop.f32.mrf.mxu2 }
 0x1c7   :  { %v200_v60 = vadd.f32 %v199_v59, %v154_v58  ;;  %v116_v57 = vpop.f32.mrf.mxu1 }
 0x1c9   :  { %v223_v61 = vsel %vm204_vm2, %v200_v60, -inf }
 0x1ca   :  { %224 = vmax.xlane.f32.xlu2 %v223_v61 }
 0x1ce   :  { %v201_v63 = vpop.f32.mrf.mxu2 }
 0x1cf   :  { %v202_v0 = vadd.f32 %v201_v63, %v155_v62 }
 0x1d1   :  { %v226_v1 = vsel %vm204_vm2, %v202_v0, -inf }
 0x1d2   :  { %227 = vmax.xlane.f32.xlu1 %v226_v1 }
 0x20d   :  { %v207_v12 = vpop.xlane.xlu0 %206 }
 0x20e   :  { %v229_v16 = vsub.f32 %v185_v36, %v207_v12 }
 0x210   :  { %v237_v18 = vmul.f32 1.442695, %v229_v16 }
 0x212   :  { %949 = vpow2.f32 %v237_v18 }
 0x215   :  { %v210_v19 = vpop.xlane.xlu1 %209 }
 0x216   :  { %v230_v20 = vsub.f32 %v187_v40, %v210_v19 }
 0x218   :  { %v1220_v21 = vpop.eup %949  ;;  %v239_v22 = vmul.f32 1.442695, %v230_v20 }
 0x219   :  { %v253_v23 = vsel %vm204_vm2, %v1220_v21, 0.0 }
 0x21a   :  { %951 = vpow2.f32 %v239_v22  ;;  %254 = vadd.xlane.f32.xlu2 %v253_v23 }
 0x21d   :  { %v213_v24 = vpop.xlane.xlu1 %212 }
 0x21e   :  { %v231_v25 = vsub.f32 %v190_v44, %v213_v24 }
 0x220   :  { %v1224_v26 = vpop.eup %951  ;;  %v241_v27 = vmul.f32 1.442695, %v231_v25 }
 0x221   :  { %v256_v8 = vsel %vm204_vm2, %v1224_v26, 0.0 }
 0x222   :  { %953 = vpow2.f32 %v241_v27  ;;  %257 = vadd.xlane.f32.xlu1 %v256_v8 }
 0x225   :  { %v216_v28 = vpop.xlane.xlu2 %215 }
 0x226   :  { %v232_v29 = vsub.f32 %v192_v48, %v216_v28 }
 0x228   :  { %v1228_v30 = vpop.eup %953  ;;  %v243_v31 = vmul.f32 1.442695, %v232_v29 }
 0x229   :  { %v259_v32 = vsel %vm204_vm2, %v1228_v30, 0.0 }
 0x22a   :  { %955 = vpow2.f32 %v243_v31  ;;  %260 = vadd.xlane.f32.xlu2 %v259_v32 }
 0x22d   :  { %v219_v33 = vpop.xlane.xlu2 %218 }
 0x22e   :  { %v233_v34 = vsub.f32 %v195_v52, %v219_v33 }
 0x230   :  { %v1232_v35 = vpop.eup %955  ;;  %v245_v36 = vmul.f32 1.442695, %v233_v34 }
 0x231   :  { %v262_v37 = vsel %vm204_vm2, %v1232_v35, 0.0 }
 0x232   :  { %957 = vpow2.f32 %v245_v36  ;;  %263 = vadd.xlane.f32.xlu1 %v262_v37 }
 0x235   :  { %v222_v38 = vpop.xlane.xlu1 %221 }
 0x236   :  { %v234_v39 = vsub.f32 %v197_v56, %v222_v38  ;;  %v64_v56 = vperm.slane %v1138_v9, 1 }
 0x238   :  { %v1236_v40 = vpop.eup %957  ;;  %v247_v41 = vmul.f32 1.442695, %v234_v39  ;;  %v115_v58 = vadd.f32 %v114_v55, %v64_v56  ;;  %v117_v59 = vadd.f32 %v116_v57, %v64_v56 }
 0x239   :  { %v265_v42 = vsel %vm204_vm2, %v1236_v40, 0.0 }
 0x23a   :  { %959 = vpow2.f32 %v247_v41  ;;  %266 = vadd.xlane.f32.xlu2 %v265_v42  ;;  %v406_v61 = vmul.f32 %v1144_v13, %v117_v59  ;;  %v407_v6 = vmul.f32 %v1149_v14, %v115_v58  ;;  %v408_v9 = vmul.f32 %v1149_v14, %v117_v59 }
 0x23b   :  { %v409_v10 = vmul.f32 %v1154_v15, %v115_v58  ;;  %v410_v11 = vmul.f32 %v1154_v15, %v117_v59  ;;  %v412_v18 = vmul.f32 %v1159_v17, %v117_v59 }
 0x23c   :  { %v422_v63 = vpack.c.bf16 %v406_v61, %v406_v61  ;;  %v423_v20 = vpack.c.bf16 %v407_v6, %v407_v6  ;;  %v424_v22 = vpack.c.bf16 %v408_v9, %v408_v9 }
 0x23d   :  { %v225_v43 = vpop.xlane.xlu2 %224  ;;  %v425_v23 = vpack.c.bf16 %v409_v10, %v409_v10  ;;  %v426_v25 = vpack.c.bf16 %v410_v11, %v410_v11  ;;  %v428_v32 = vpack.c.bf16 %v412_v18, %v412_v18 }
 0x23e   :  { %v235_v44 = vsub.f32 %v200_v60, %v225_v43  ;;  %v405_v60 = vmul.f32 %v1144_v13, %v115_v58  ;;  %v437_v1 = vunpack.c.l.b16 %v422_v63  ;;  %v411_v13 = vmul.f32 %v1159_v17, %v115_v58 }
 0x23f   :  { %v464_v8 = vunpack.c.l.b16 %v423_v20  ;;  %v465_v28 = vunpack.c.l.b16 %v424_v22  ;;  %v492_v29 = vunpack.c.l.b16 %v425_v23  ;;  %v493_v31 = vunpack.c.l.b16 %v426_v25 }
 0x240   :  { %v1240_v45 = vpop.eup %959  ;;  %v249_v46 = vmul.f32 1.442695, %v235_v44  ;;  %v421_v62 = vpack.c.bf16 %v405_v60, %v405_v60  ;;  %v427_v27 = vpack.c.bf16 %v411_v13, %v411_v13  ;;  %v521_v38 = vunpack.c.l.b16 %v428_v32 }
 0x241   :  { %v268_v47 = vsel %vm204_vm2, %v1240_v45, 0.0  ;;  %v466_v34 = vpack.c.b16 %v465_v28, %v464_v8  ;;  %v494_v37 = vpack.c.b16 %v493_v31, %v492_v29 }
 0x242   :  { %961 = vpow2.f32 %v249_v46  ;;  %269 = vadd.xlane.f32.xlu1 %v268_v47  ;;  %v520_v36 = vunpack.c.l.b16 %v427_v27 }
 0x243   :  { %506 = vmatpush.bf16.msrb.mxu0 %v494_v37 }
 0x244   :  { %v522_v47 = vpack.c.b16 %v521_v38, %v520_v36 }
 0x245   :  { %v228_v48 = vpop.xlane.xlu1 %227 }
 0x246   :  { %v236_v49 = vsub.f32 %v202_v0, %v228_v48  ;;  %v436_v0 = vunpack.c.l.b16 %v421_v62  ;;  %534 = vmatpush.bf16.msrb.mxu1 %v522_v47 }
 0x248   :  { %v1244_v50 = vpop.eup %961  ;;  %v251_v51 = vmul.f32 1.442695, %v236_v49  ;;  %v438_v2 = vpack.c.b16 %v437_v1, %v436_v0 }
 0x249   :  { %v271_v52 = vsel %vm204_vm2, %v1244_v50, 0.0 }
 0x24a   :  { %963 = vpow2.f32 %v251_v51  ;;  %272 = vadd.xlane.f32.xlu2 %v271_v52  ;;  %450 = vmatpush.bf16.msra.mxu3 %v438_v2 }
 0x24e   :  { %478 = vmatpush.bf16.msrb.mxu3 %v466_v34 }
 0x250   :  { %v1248_v53 = vpop.eup %963 }
 0x251   :  { %v274_v54 = vsel %vm204_vm2, %v1248_v53, 0.0 }
 0x252   :  { %275 = vadd.xlane.f32.xlu0 %v274_v54 }
 0x28d   :  { %v255_v3 = vpop.xlane.xlu2 %254 }
 0x28e   :  { %965 = vrcp.f32 %v255_v3  ;;  %v288_v24 = vand.u32 2147483648, %v255_v3  ;;  %v286_v15 = vand.u32 2147483647, %v255_v3  ;;  %vm282_vm4 = vweird.f32 %v255_v3 }
 0x290   :  { %v289_v39 = vor.u32 1.1754944e-38, %v288_v24  ;;  %vm287_vm6 = vcmp.eq.f32.partialorder %v286_v15, 8.507059e+37 }
 0x294   :  { %v966_v4 = vpop.eup %965 }
 0x295   :  { %v278_v12 = vmul.f32 %v966_v4, %v255_v3  ;;  %v258_v16 = vpop.xlane.xlu1 %257  ;;  %vm283_vm3 = vweird.f32 %v966_v4 }
 0x296   :  { %967 = vrcp.f32 %v258_v16  ;;  %vm284_vm5 = vmor %vm282_vm4, %vm283_vm3  ;;  %v302_v51 = vand.u32 2147483648, %v258_v16  ;;  %v300_v52 = vand.u32 2147483647, %v258_v16  ;;  %vm296_vm8 = vweird.f32 %v258_v16 }
 0x297   :  { %v279_v19 = vsub.f32 1.0, %v278_v12 }
 0x298   :  { %v303_v56 = vor.u32 1.1754944e-38, %v302_v51  ;;  %vm301_vm10 = vcmp.eq.f32.partialorder %v300_v52, 8.507059e+37 }
 0x299   :  { %v280_v14 = vmul.f32 %v966_v4, %v279_v19 }
 0x29b   :  { %v281_v33 = vadd.f32 %v966_v4, %v280_v14 }
 0x29c   :  { %v968_v17 = vpop.eup %967 }
 0x29d   :  { %v292_v41 = vmul.f32 %v968_v17, %v258_v16  ;;  %v261_v42 = vpop.xlane.xlu2 %260  ;;  %v285_v43 = vsel %vm284_vm5, %v966_v4, %v281_v33  ;;  %vm297_vm7 = vweird.f32 %v968_v17 }
 0x29e   :  { %969 = vrcp.f32 %v261_v42  ;;  %v290_v46 = vsel %vm287_vm6, %v289_v39, %v285_v43  ;;  %vm298_vm9 = vmor %vm296_vm8, %vm297_vm7  ;;  %v316_v61 = vand.u32 2147483648, %v261_v42  ;;  %v314_v0 = vand.u32 2147483647, %v261_v42 }
 0x29f   :  { %v293_v44 = vsub.f32 1.0, %v292_v41  ;;  %v389_v48 = vmul.f32 %v1220_v21, %v290_v46  ;;  %vm310_vm12 = vweird.f32 %v261_v42 }
 0x2a0   :  { %v317_v6 = vor.u32 1.1754944e-38, %v316_v61  ;;  %vm315_vm14 = vcmp.eq.f32.partialorder %v314_v0, 8.507059e+37 }
 0x2a1   :  { %v294_v49 = vmul.f32 %v968_v17, %v293_v44  ;;  %397 = vst.msk [vmem:[%s1409_s16] sm:$0xff] %vm204_vm2, %v389_v48  ;;  %v413_v1 = vpack.c.bf16 %v389_v48, %v389_v48 }
 0x2a3   :  { %v295_v54 = vadd.f32 %v968_v17, %v294_v49  ;;  %v431_v12 = vunpack.c.l.b16 %v413_v1 }
 0x2a4   :  { %v970_v55 = vpop.eup %969 }
 0x2a5   :  { %v306_v57 = vmul.f32 %v970_v55, %v261_v42  ;;  %v264_v58 = vpop.xlane.xlu1 %263  ;;  %v299_v59 = vsel %vm298_vm9, %v968_v17, %v295_v54  ;;  %vm311_vm11 = vweird.f32 %v970_v55 }
 0x2a6   :  { %971 = vrcp.f32 %v264_v58  ;;  %v304_v60 = vsel %vm301_vm10, %v303_v56, %v299_v59  ;;  %vm312_vm13 = vmor %vm310_vm12, %vm311_vm11  ;;  %v330_v20 = vand.u32 2147483648, %v264_v58  ;;  %v328_v23 = vand.u32 2147483647, %v264_v58 }
 0x2a7   :  { %v307_v21 = vsub.f32 1.0, %v306_v57  ;;  %v390_v62 = vmul.f32 %v1224_v26, %v304_v60  ;;  %vm324_vm3 = vweird.f32 %v264_v58 }
 0x2a8   :  { %v331_v27 = vor.u32 1.1754944e-38, %v330_v20  ;;  %vm329_vm5 = vcmp.eq.f32.partialorder %v328_v23, 8.507059e+37 }
 0x2a9   :  { %v308_v63 = vmul.f32 %v970_v55, %v307_v21  ;;  %398 = vst.msk [vmem:[%s1409_s16 + $0x8] sm:$0xff] %vm204_vm2, %v390_v62  ;;  %v414_v2 = vpack.c.bf16 %v390_v62, %v390_v62 }
 0x2ab   :  { %v309_v3 = vadd.f32 %v970_v55, %v308_v63  ;;  %v432_v9 = vunpack.c.l.b16 %v414_v2 }
 0x2ac   :  { %v972_v4 = vpop.eup %971 }
 0x2ad   :  { %v313_v10 = vsel %vm312_vm13, %v970_v55, %v309_v3  ;;  %v320_v11 = vmul.f32 %v972_v4, %v264_v58  ;;  %v267_v26 = vpop.xlane.xlu2 %266  ;;  %v433_v18 = vpack.c.b16 %v432_v9, %v431_v12  ;;  %vm325_vm15 = vweird.f32 %v972_v4 }
 0x2ae   :  { %v318_v16 = vsel %vm315_vm14, %v317_v6, %v313_v10  ;;  %973 = vrcp.f32 %v267_v26  ;;  %vm326_vm4 = vmor %vm324_vm3, %vm325_vm15  ;;  %v344_v32 = vand.u32 2147483648, %v267_v26  ;;  %v342_v34 = vand.u32 2147483647, %v267_v26 }
 0x2af   :  { %v321_v13 = vsub.f32 1.0, %v320_v11  ;;  %v391_v19 = vmul.f32 %v1228_v30, %v318_v16  ;;  %872 = vmatmul.msk.bf16.vlgmr.msra.gmra.mxu3 %vm204_vm2, %v433_v18  ;;  %vm338_vm7 = vweird.f32 %v267_v26 }
 0x2b0   :  { %v345_v41 = vor.u32 1.1754944e-38, %v344_v32  ;;  %vm343_vm9 = vcmp.eq.f32.partialorder %v342_v34, 8.507059e+37 }
 0x2b1   :  { %v322_v22 = vmul.f32 %v972_v4, %v321_v13  ;;  %399 = vst.msk [vmem:[%s1409_s16 + $0x10] sm:$0xff] %vm204_vm2, %v391_v19  ;;  %v415_v31 = vpack.c.bf16 %v391_v19, %v391_v19 }
 0x2b3   :  { %v323_v24 = vadd.f32 %v972_v4, %v322_v22  ;;  %v459_v37 = vunpack.c.l.b16 %v415_v31  ;;  %v923_v31 = vld [vmem:[%s1398_s5] sm:$0xff] }
 0x2b4   :  { %v974_v25 = vpop.eup %973 }
 0x2b5   :  { %v327_v14 = vsel %vm326_vm4, %v972_v4, %v323_v24  ;;  %v334_v8 = vmul.f32 %v974_v25, %v267_v26  ;;  %v270_v30 = vpop.xlane.xlu1 %269  ;;  %vm339_vm6 = vweird.f32 %v974_v25 }
 0x2b6   :  { %v332_v28 = vsel %vm329_vm5, %v331_v27, %v327_v14  ;;  %975 = vrcp.f32 %v270_v30  ;;  %vm340_vm8 = vmor %vm338_vm7, %vm339_vm6  ;;  %v358_v49 = vand.u32 2147483648, %v270_v30  ;;  %v356_v52 = vand.u32 2147483647, %v270_v30 }
 0x2b7   :  { %v335_v29 = vsub.f32 1.0, %v334_v8  ;;  %v392_v15 = vmul.f32 %v1232_v35, %v332_v28  ;;  %vm352_vm11 = vweird.f32 %v270_v30  ;;  %v926_v28 = vld [vmem:[%s1398_s5 + $0x18] sm:$0xff] }
 0x2b8   :  { %v359_v56 = vor.u32 1.1754944e-38, %v358_v49  ;;  %vm357_vm13 = vcmp.eq.f32.partialorder %v356_v52, 8.507059e+37  ;;  %599 = vmatpush.bf16.msra.mxu3 %v926_v28 }
 0x2b9   :  { %v336_v33 = vmul.f32 %v974_v25, %v335_v29  ;;  %400 = vst.msk [vmem:[%s1409_s16 + $0x18] sm:$0xff] %vm204_vm2, %v392_v15  ;;  %v416_v36 = vpack.c.bf16 %v392_v15, %v392_v15  ;;  %v924_v15 = vld [vmem:[%s1398_s5 + $0x8] sm:$0xff] }
 0x2bb   :  { %v337_v17 = vadd.f32 %v974_v25, %v336_v33  ;;  %v460_v38 = vunpack.c.l.b16 %v416_v36 }
 0x2bc   :  { %v976_v39 = vpop.eup %975 }
 0x2bd   :  { %v341_v42 = vsel %vm340_vm8, %v974_v25, %v337_v17  ;;  %v348_v35 = vmul.f32 %v976_v39, %v270_v30  ;;  %v273_v43 = vpop.xlane.xlu2 %272  ;;  %v461_v44 = vpack.c.b16 %v460_v38, %v459_v37  ;;  %vm353_vm10 = vweird.f32 %v976_v39 }
 0x2be   :  { %v346_v46 = vsel %vm343_vm9, %v345_v41, %v341_v42  ;;  %977 = vrcp.f32 %v273_v43  ;;  %vm354_vm12 = vmor %vm352_vm11, %vm353_vm10  ;;  %v372_v62 = vand.u32 2147483648, %v273_v43  ;;  %v370_v0 = vand.u32 2147483647, %v273_v43 }
 0x2bf   :  { %v349_v47 = vsub.f32 1.0, %v348_v35  ;;  %v393_v48 = vmul.f32 %v1236_v40, %v346_v46  ;;  %873 = vmatmul.msk.bf16.vlgmr.msrb.gmra.mxu3 %vm204_vm2, %v461_v44  ;;  %vm366_vm15 = vweird.f32 %v273_v43 }
 0x2c0   :  { %v373_v9 = vor.u32 1.1754944e-38, %v372_v62  ;;  %vm371_vm4 = vcmp.eq.f32.partialorder %v370_v0, 8.507059e+37  ;;  %v1018_v0 = vmov 32.0  }
 0x2c1   :  { %v350_v51 = vmul.f32 %v976_v39, %v349_v47  ;;  %401 = vst.msk [vmem:[%s1409_s16 + $0x20] sm:$0xff] %vm204_vm2, %v393_v48  ;;  %v417_v61 = vpack.c.bf16 %v393_v48, %v393_v48 }
 0x2c3   :  { %v351_v54 = vadd.f32 %v976_v39, %v350_v51  ;;  %v487_v3 = vunpack.c.l.b16 %v417_v61 }
 0x2c4   :  { %v978_v55 = vpop.eup %977 }
 0x2c5   :  { %v355_v57 = vsel %vm354_vm12, %v976_v39, %v351_v54  ;;  %v362_v58 = vmul.f32 %v978_v55, %v273_v43  ;;  %v276_v40 = vpop.xlane.xlu0 %275  ;;  %vm367_vm14 = vweird.f32 %v978_v55 }
 0x2c6   :  { %v360_v59 = vsel %vm357_vm13, %v359_v56, %v355_v57  ;;  %979 = vrcp.f32 %v276_v40  ;;  %vm368_vm3 = vmor %vm366_vm15, %vm367_vm14  ;;  %v386_v13 = vand.u32 2147483648, %v276_v40  ;;  %v384_v19 = vand.u32 2147483647, %v276_v40  ;;  %v942_v57 = vld [vmem:[%s1399_s6] ss:$0 sm:$0xff]  ;;  %s1021_s6 = smov 8  }
 0x2c7   :  { %v363_v21 = vsub.f32 1.0, %v362_v58  ;;  %v394_v60 = vmul.f32 %v1240_v45, %v360_v59  ;;  %vm380_vm6 = vweird.f32 %v276_v40  ;;  %981 = vrcp.f32 %v1018_v0 }
 0x2c8   :  { %v387_v22 = vor.u32 1.1754944e-38, %v386_v13  ;;  %vm385_vm8 = vcmp.eq.f32.partialorder %v384_v19, 8.507059e+37 }
 0x2c9   :  { %v364_v63 = vmul.f32 %v978_v55, %v363_v21  ;;  %402 = vst.msk [vmem:[%s1409_s16 + $0x28] sm:$0xff] %vm204_vm2, %v394_v60  ;;  %v418_v1 = vpack.c.bf16 %v394_v60, %v394_v60 }
 0x2cb   :  { %v365_v2 = vadd.f32 %v978_v55, %v364_v63  ;;  %v488_v4 = vunpack.c.l.b16 %v418_v1 }
 0x2cc   :  { %v980_v6 = vpop.eup %979 }
 0x2cd   :  { %v369_v10 = vsel %vm368_vm3, %v978_v55, %v365_v2  ;;  %v376_v45 = vmul.f32 %v980_v6, %v276_v40  ;;  %v489_v11 = vpack.c.b16 %v488_v4, %v487_v3  ;;  %vm381_vm5 = vweird.f32 %v980_v6  ;;  %v982_v1 = vpop.eup %981 }
 0x2ce   :  { %v374_v26 = vsel %vm371_vm4, %v373_v9, %v369_v10  ;;  %vm382_vm7 = vmor %vm380_vm6, %vm381_vm5  ;;  %v620_v2 = vmul.f32 32.0, %v982_v1 }
 0x2cf   :  { %v377_v12 = vsub.f32 1.0, %v376_v45  ;;  %874 = vmatmul.msk.bf16.vlgmr.msrb.gmra.mxu0 %vm204_vm2, %v489_v11  ;;  %v395_v16 = vmul.f32 %v1244_v50, %v374_v26 }
 0x2d0   :  { %v621_v3 = vsub.f32 1.0, %v620_v2 }
 0x2d1   :  { %v378_v18 = vmul.f32 %v980_v6, %v377_v12  ;;  %403 = vst.msk [vmem:[%s1409_s16 + $0x30] sm:$0xff] %vm204_vm2, %v395_v16  ;;  %v419_v27 = vpack.c.bf16 %v395_v16, %v395_v16 }
 0x2d2   :  { %v622_v4 = vmul.f32 %v982_v1, %v621_v3 }
 0x2d3   :  { %v379_v20 = vadd.f32 %v980_v6, %v378_v18  ;;  %v515_v14 = vunpack.c.l.b16 %v419_v27 }
 0x2d5   :  { %v383_v23 = vsel %vm382_vm7, %v980_v6, %v379_v20  ;;  %v623_v6 = vadd.f32 %v982_v1, %v622_v4  ;;  %v928_v20 = vld [vmem:[%s1402_s9 + $0x8] sm:$0xff] }
 0x2d6   :  { %v388_v24 = vsel %vm385_vm8, %v387_v22, %v383_v23  ;;  %704 = vmatpush.bf16.msra.mxu0 %v928_v20 }
 0x2d7   :  { %v396_v25 = vmul.f32 %v1248_v53, %v388_v24  ;;  %v925_v53 = vld [vmem:[%s1398_s5 + $0x10] sm:$0xff]  ;;  %v927_v24 = vld [vmem:[%s1402_s9] sm:$0xff] }
 0x2d8   :  { %600 = vmatpush.bf16.msra.mxu3 %v925_v53 }
 0x2d9   :  { %404 = vst.msk [vmem:[%s1409_s16 + $0x38] sm:$0xff] %vm204_vm2, %v396_v25  ;;  %v420_v50 = vpack.c.bf16 %v396_v25, %v396_v25  ;;  %v932_v25 = vld [vmem:[%s1404_s11 + $0x18] sm:$0xff] }
 0x2da   :  { %705 = vmatpush.bf16.msra.mxu0 %v927_v24  ;;  %758 = vmatpush.bf16.msra.mxu1 %v932_v25 }
 0x2db   :  { %v516_v8 = vunpack.c.l.b16 %v420_v50 }
 0x2dc   :  { %601 = vmatpush.bf16.msra.mxu3 %v924_v15 }
 0x2dd   :  { %v517_v30 = vpack.c.b16 %v516_v8, %v515_v14 }
 0x2df   :  { %875 = vmatmul.msk.bf16.vlgmr.msrb.gmra.mxu1 %vm204_vm2, %v517_v30  ;;  %vm624_vm2 = vweird.f32 %v982_v1 }
 0x2e0   :  { %602 = vmatpush.bf16.msra.mxu3 %v923_v31  ;;  %v1334_v9 = vsel %vm624_vm2, %v982_v1, %v623_v6 }
 0x332   :  { %v452_v29 = vpop.f32.mrf.mxu3 }
 0x333   :  { %v541_v41 = vsel %vm159_vm1, %v452_v29, 0.0 }
 0x33a   :  { %v454_v32 = vpop.f32.mrf.mxu3 }
 0x33b   :  { %v548_v42 = vsel %vm159_vm1, %v454_v32, 0.0 }
 0x342   :  { %v480_v33 = vpop.f32.mrf.mxu3 }
 0x343   :  { %v542_v38 = vsel %vm159_vm1, %v480_v33, 0.0 }
 0x344   :  { %v543_v44 = vadd.f32 %v542_v38, %v541_v41 }
 0x34a   :  { %v482_v36 = vpop.f32.mrf.mxu3 }
 0x34b   :  { %v549_v39 = vsel %vm159_vm1, %v482_v36, 0.0 }
 0x34c   :  { %v508_v34 = vpop.f32.mrf.mxu0  ;;  %v550_v46 = vadd.f32 %v549_v39, %v548_v42  ;;  %v944_v42 = vld [vmem:[%s1401_s8] ss:$0 sm:$0xff] }
 0x34d   :  { %v544_v35 = vsel %vm159_vm1, %v508_v34, 0.0 }
 0x34e   :  { %v545_v48 = vadd.f32 %v544_v35, %v543_v44 }
 0x354   :  { %v510_v37 = vpop.f32.mrf.mxu0 }
 0x355   :  { %v551_v43 = vsel %vm159_vm1, %v510_v37, 0.0  ;;  %v943_v37 = vld [vmem:[%s1400_s7] ss:$0 sm:$0xff] }
 0x356   :  { %v552_v49 = vadd.f32 %v551_v43, %v550_v46 }
 0x35c   :  { %v536_v17 = vpop.f32.mrf.mxu1 }
 0x35d   :  { %v546_v47 = vsel %vm159_vm1, %v536_v17, 0.0 }
 0x35e   :  { %v547_v54 = vadd.f32 %v546_v47, %v545_v48 }
 0x364   :  { %v538_v51 = vpop.f32.mrf.mxu1 }
 0x365   :  { %v553_v52 = vsel %vm159_vm1, %v538_v51, 0.0  ;;  %v930_v51 = vld [vmem:[%s1404_s11 + $0x8] sm:$0xff] }
 0x366   :  { %v554_v55 = vadd.f32 %v553_v52, %v552_v49  ;;  %v931_v49 = vld [vmem:[%s1404_s11 + $0x10] sm:$0xff]  ;;  %v929_v52 = vld [vmem:[%s1404_s11] sm:$0xff] }
 0x367   :  { %759 = vmatpush.bf16.msra.mxu1 %v931_v49 }
 0x368   :  { %v555_v56 = vpack.c.bf16 %v554_v55, %v547_v54  ;;  %v945_v55 = vld [vmem:[%s1403_s10] ss:$0 sm:$0xff] }
 0x36a   :  { %892 = vmatmul.msk.bf16.vlgmr.msra.gmra.mxu3 %vm159_vm1, %v555_v56 }
 0x36b   :  { %760 = vmatpush.bf16.msra.mxu1 %v930_v51 }
 0x36f   :  { %761 = vmatpush.bf16.msra.mxu1 %v929_v52 }
 0x3ed   :  { %v604_v58 = vpop.f32.mrf.mxu3 }
 0x3ee   :  { %v605_v40 = vadd.f32 %v942_v57, %v604_v58 }
 0x3f0   :  { %v609_v59 = vadd.f32 %v605_v40, %v1122_v5 }
 0x3f2   :  { %v613_v21 = vsel %vm87_vm0, %v609_v59, 0.0 }
 0x3f3   :  { %614 = vadd.xlane.f32.xlu1 %v613_v21 }
 0x3f5   :  { %v606_v60 = vpop.f32.mrf.mxu3 }
 0x3f6   :  { %v607_v61 = vadd.f32 %v942_v57, %v606_v60  ;;  %v946_v60 = vld [vmem:[%s1405_s12] ss:$0 sm:$0xff] }
 0x3f8   :  { %v610_v62 = vadd.f32 %v607_v61, %v1127_v7 }
 0x3fa   :  { %v616_v63 = vsel %vm87_vm0, %v610_v62, 0.0 }
 0x3fb   :  { %617 = vadd.xlane.f32.xlu2 %v616_v63 }
 0x466   :  { %v615_v5 = vpop.xlane.xlu1 %614 }
 0x467   :  { %v626_v10 = vmul.f32 %v1334_v9, %v615_v5 }
 0x469   :  { %v628_v45 = vsub.f32 %v609_v59, %v626_v10 }
 0x46b   :  { %v630_v11 = vmul.f32 %v628_v45, %v628_v45 }
 0x46d   :  { %v632_v7 = vsel %vm87_vm0, %v630_v11, 0.0 }
 0x46e   :  { %v618_v26 = vpop.xlane.xlu2 %617  ;;  %633 = vadd.xlane.f32.xlu0 %v632_v7 }
 0x46f   :  { %v627_v12 = vmul.f32 %v1334_v9, %v618_v26 }
 0x471   :  { %v629_v16 = vsub.f32 %v610_v62, %v627_v12 }
 0x473   :  { %v631_v13 = vmul.f32 %v629_v16, %v629_v16 }
 0x475   :  { %v635_v18 = vsel %vm87_vm0, %v631_v13, 0.0 }
 0x476   :  { %636 = vadd.xlane.f32.xlu1 %v635_v18 }
 0x4e1   :  { %v634_v19 = vpop.xlane.xlu0 %633 }
 0x4e2   :  { %v638_v22 = vmul.f32 %v634_v19, %v1334_v9 }
 0x4e4   :  { %v640_v23 = vadd.f32 1e-05, %v638_v22 }
 0x4e6   :  { %983 = vrsqrt.f32 %v640_v23  ;;  %vm648_vm10 = vweird.f32 %v640_v23 }
 0x4e9   :  { %v637_v27 = vpop.xlane.xlu1 %636 }
 0x4ea   :  { %v639_v50 = vmul.f32 %v637_v27, %v1334_v9 }
 0x4ec   :  { %v984_v14 = vpop.eup %983  ;;  %v641_v8 = vadd.f32 1e-05, %v639_v50 }
 0x4ed   :  { %v643_v30 = vmul.f32 %v984_v14, %v640_v23  ;;  %vm649_vm9 = vweird.f32 %v984_v14 }
 0x4ee   :  { %985 = vrsqrt.f32 %v641_v8  ;;  %vm650_vm11 = vmor %vm648_vm10, %vm649_vm9  ;;  %vm658_vm13 = vweird.f32 %v641_v8 }
 0x4ef   :  { %v644_v28 = vmul.f32 %v984_v14, %v643_v30 }
 0x4f1   :  { %v645_v29 = vmul.f32 0.5, %v644_v28 }
 0x4f3   :  { %v646_v53 = vsub.f32 1.5, %v645_v29 }
 0x4f4   :  { %v986_v15 = vpop.eup %985 }
 0x4f5   :  { %v647_v31 = vmul.f32 %v984_v14, %v646_v53  ;;  %v653_v32 = vmul.f32 %v986_v15, %v641_v8  ;;  %vm659_vm12 = vweird.f32 %v986_v15  ;;  %v947_v53 = vld [vmem:[%s1406_s13] ss:$0 sm:$0xff]  ;;  %s1019_s13 = smov [#allocation2]  }
 0x4f6   :  { %vm660_vm14 = vmor %vm658_vm13, %vm659_vm12  ;;  %s832_s16 = sshll.u32 %s1019_s13, 4  ;;  %s833_s16 = int_to_ptr.vmem [resolvable:$true] %s832_s16 }
 0x4f7   :  { %v654_v33 = vmul.f32 %v986_v15, %v653_v32  ;;  %v651_v34 = vsel %vm650_vm11, %v984_v14, %v647_v31  ;;  %v948_v32 = vld [vmem:[%s1407_s14] ss:$0 sm:$0xff]  ;;  %s1020_s14 = smov 128  }
 0x4f8   :  { %v662_v38 = vmul.f32 %v651_v34, %v628_v45 }
 0x4f9   :  { %v655_v36 = vmul.f32 0.5, %v654_v33 }
 0x4fa   :  { %v667_v35 = vmul.f32 %v943_v37, %v662_v38 }
 0x4fb   :  { %v656_v17 = vsub.f32 1.5, %v655_v36 }
 0x4fc   :  { %v672_v46 = vadd.f32 %v944_v42, %v667_v35 }
 0x4fd   :  { %v657_v39 = vmul.f32 %v986_v15, %v656_v17 }
 0x4ff   :  { %v661_v41 = vsel %vm660_vm14, %v986_v15, %v657_v39 }
 0x500   :  { %v663_v43 = vmul.f32 %v661_v41, %v629_v16 }
 0x502   :  { %v668_v44 = vmul.f32 %v943_v37, %v663_v43 }
 0x504   :  { %v673_v47 = vadd.f32 %v944_v42, %v668_v44 }
 0x506   :  { %v674_v48 = vpack.c.bf16 %v673_v47, %v672_v46 }
 0x508   :  { %901 = vmatmul.msk.bf16.vlgmr.msra.gmra.mxu0 %vm87_vm0, %v674_v48 }
 0x585   :  { %v707_v54 = vpop.f32.mrf.mxu0 }
 0x586   :  { %v708_v56 = vadd.f32 %v945_v55, %v707_v54 }
 0x588   :  { %v712_v40 = vmax.f32 %v708_v56, 0.0 }
 0x58d   :  { %v709_v57 = vpop.f32.mrf.mxu0 }
 0x58e   :  { %v710_v58 = vadd.f32 %v945_v55, %v709_v57 }
 0x590   :  { %v713_v59 = vmax.f32 %v710_v58, 0.0 }
 0x592   :  { %v714_v21 = vpack.c.bf16 %v713_v59, %v712_v40 }
 0x594   :  { %918 = vmatmul.msk.bf16.vlgmr.msra.gmra.mxu1 %vm159_vm1, %v714_v21 }
 0x611   :  { %v763_v61 = vpop.f32.mrf.mxu1 }
 0x612   :  { %v764_v62 = vadd.f32 %v946_v60, %v763_v61 }
 0x614   :  { %v768_v63 = vadd.f32 %v764_v62, %v672_v46 }
 0x616   :  { %v772_v0 = vsel %vm87_vm0, %v768_v63, 0.0 }
 0x617   :  { %773 = vadd.xlane.f32.xlu2 %v772_v0 }
 0x619   :  { %v765_v1 = vpop.f32.mrf.mxu1 }
 0x61a   :  { %v766_v2 = vadd.f32 %v946_v60, %v765_v1 }
 0x61c   :  { %v769_v3 = vadd.f32 %v766_v2, %v673_v47 }
 0x61e   :  { %v775_v4 = vsel %vm87_vm0, %v769_v3, 0.0 }
 0x61f   :  { %776 = vadd.xlane.f32.xlu0 %v775_v4 }
 0x68a   :  { %v774_v6 = vpop.xlane.xlu2 %773 }
 0x68b   :  { %v778_v5 = vmul.f32 %v774_v6, %v1334_v9 }
 0x68d   :  { %v780_v10 = vsub.f32 %v768_v63, %v778_v5 }
 0x68f   :  { %v782_v45 = vmul.f32 %v780_v10, %v780_v10 }
 0x691   :  { %v784_v11 = vsel %vm87_vm0, %v782_v45, 0.0 }
 0x692   :  { %v777_v7 = vpop.xlane.xlu0 %776  ;;  %785 = vadd.xlane.f32.xlu1 %v784_v11 }
 0x693   :  { %v779_v26 = vmul.f32 %v777_v7, %v1334_v9 }
 0x695   :  { %v781_v12 = vsub.f32 %v769_v3, %v779_v26 }
 0x697   :  { %v783_v16 = vmul.f32 %v781_v12, %v781_v12 }
 0x699   :  { %v787_v13 = vsel %vm87_vm0, %v783_v16, 0.0 }
 0x69a   :  { %788 = vadd.xlane.f32.xlu2 %v787_v13 }
 0x705   :  { %v786_v18 = vpop.xlane.xlu1 %785 }
 0x706   :  { %v790_v19 = vmul.f32 %v786_v18, %v1334_v9 }
 0x708   :  { %v792_v20 = vadd.f32 1e-05, %v790_v19 }
 0x70a   :  { %987 = vrsqrt.f32 %v792_v20  ;;  %vm800_vm15 = vweird.f32 %v792_v20 }
 0x70d   :  { %v789_v22 = vpop.xlane.xlu2 %788 }
 0x70e   :  { %v791_v23 = vmul.f32 %v789_v22, %v1334_v9 }
 0x710   :  { %v988_v24 = vpop.eup %987  ;;  %v793_v25 = vadd.f32 1e-05, %v791_v23 }
 0x711   :  { %v795_v27 = vmul.f32 %v988_v24, %v792_v20  ;;  %vm801_vm1 = vweird.f32 %v988_v24 }
 0x712   :  { %989 = vrsqrt.f32 %v793_v25  ;;  %vm802_vm3 = vmor %vm800_vm15, %vm801_vm1  ;;  %vm810_vm5 = vweird.f32 %v793_v25 }
 0x713   :  { %v796_v50 = vmul.f32 %v988_v24, %v795_v27 }
 0x715   :  { %v797_v14 = vmul.f32 0.5, %v796_v50 }
 0x717   :  { %v798_v8 = vsub.f32 1.5, %v797_v14 }
 0x718   :  { %v990_v30 = vpop.eup %989 }
 0x719   :  { %v799_v28 = vmul.f32 %v988_v24, %v798_v8  ;;  %v805_v29 = vmul.f32 %v990_v30, %v793_v25  ;;  %vm811_vm4 = vweird.f32 %v990_v30 }
 0x71a   :  { %vm812_vm6 = vmor %vm810_vm5, %vm811_vm4 }
 0x71b   :  { %v803_v15 = vsel %vm802_vm3, %v988_v24, %v799_v28  ;;  %v806_v31 = vmul.f32 %v990_v30, %v805_v29 }
 0x71c   :  { %v814_v9 = vmul.f32 %v803_v15, %v780_v10 }
 0x71d   :  { %v807_v33 = vmul.f32 0.5, %v806_v31 }
 0x71e   :  { %v819_v34 = vmul.f32 %v947_v53, %v814_v9 }
 0x71f   :  { %v808_v36 = vsub.f32 1.5, %v807_v33 }
 0x720   :  { %v824_v17 = vadd.f32 %v948_v32, %v819_v34 }
 0x721   :  { %v809_v37 = vmul.f32 %v990_v30, %v808_v36 }
 0x722   :  { %826 = vst.msk [vmem:[#allocation2] sm:$0xff] %vm87_vm0, %v824_v17 }
 0x723   :  { %v813_v38 = vsel %vm812_vm6, %v990_v30, %v809_v37 }
 0x724   :  { %v815_v39 = vmul.f32 %v813_v38, %v781_v12 }
 0x726   :  { %v820_v41 = vmul.f32 %v947_v53, %v815_v39 }
 0x728   :  { %v825_v42 = vadd.f32 %v948_v32, %v820_v41 }
 0x72a   :  { %827 = vst.msk [vmem:[#allocation2 + $0x8] sm:$0xff] %vm87_vm0, %v825_v42 }
 0x72b   :  { %840 = dma.vmem_to_hbm [thread:$0]  %s833_s16, 256, %s835_s22, [#allocation3], %s1020_s14, %s1020_s14, %s1021_s6  }
 0x72c   :  { %1015 = dma.done.wait [#allocation3], 256  }
 0x72d   :  { %1016 = vsyncadd [#allocation3], 4294967040 }
 0x72e   :  { %849 = vsyncpa [#allocation3], 1 }

</bundles_post_ra>
